<compile_context>
chip_gen: v6e
topology: v6e:2x2x1
jax: 0.10.0
libtpu: 0.0.40
codegen_flags: <defaults>
</compile_context>

<pallas_src>
import jax
import jax.numpy as jnp
from jax.experimental import pallas as pl
from jax.experimental.pallas import tpu as pltpu


def _identity_kernel(x_ref, o_ref):
    # Elementwise pass-through on the current VMEM tile.
    o_ref[...] = x_ref[...]


_LANE_CANDIDATES = (4096, 2048, 1024, 512, 256, 128)
_TILE_BUDGET_BYTES = 4 << 20   # ~4 MiB per tile buffer (4 bufs = 16 MiB)
_SUBLANE_ALIGN = 32            # covers f32 (8), bf16 (16), int8 (32) packing
_VMEM_LIMIT_BYTES = 48 << 20   # explicit scoped-VMEM limit, under v7x's 64 MiB


def _choose_lane_width(total):
    """Largest lane-dense width (multiple of 128) dividing `total`, preferring
    one that still leaves >= 8 rows for tiling. None if 128 does not divide."""
    best = None
    for lane in _LANE_CANDIDATES:
        if total % lane == 0:
            if best is None:
                best = lane
            if total // lane >= 8:
                return lane
    return best


def _choose_tile_rows(rows, lane, itemsize):
    """Sublane-aligned row tile sized to ~_TILE_BUDGET_BYTES per VMEM buffer,
    capped so the grid keeps >= 2 blocks (v7x dual TensorCore), preferring a
    tile that evenly divides rows (no ragged/masked last block)."""
    budget_rows = max(1, _TILE_BUDGET_BYTES // (lane * itemsize))
    t = min(budget_rows, rows)

    # Keep >= 2 grid blocks when rows allow, so the 'parallel' axis can be
    # sharded across both v7x TensorCores (free on single-TC v5e/v6e).
    half = (rows // 2) // 8 * 8
    if half >= 8:
        t = min(t, half)

    if t >= _SUBLANE_ALIGN:
        t = (t // _SUBLANE_ALIGN) * _SUBLANE_ALIGN
    elif t >= 8:
        t = (t // 8) * 8
    else:
        # Tiny arrays: a single full-extent block is legal and fits trivially.
        return rows

    # Prefer an even divisor of rows within ~20% below the budget tile.
    if rows % t != 0:
        lo = max(8, (int(t * 0.8) // 8) * 8)
        for cand in range(t, lo - 1, -8):
            if rows % cand == 0:
                return cand
    return max(t, 8)


def _lane_dense_copy(x2d, tile_rows):
    """Tiled, lane-dense streaming copy (the kernel path)."""
    rows, lane = x2d.shape
    return pl.pallas_call(
        _identity_kernel,
        out_shape=jax.ShapeDtypeStruct((rows, lane), x2d.dtype),
        grid_spec=pltpu.PrefetchScalarGridSpec(
            num_scalar_prefetch=0,
            grid=(pl.cdiv(rows, tile_rows),),
            in_specs=[pl.BlockSpec((tile_rows, lane), lambda i: (i, 0))],
            out_specs=pl.BlockSpec((tile_rows, lane), lambda i: (i, 0)),
        ),
        compiler_params=pltpu.CompilerParams(
            dimension_semantics=("parallel",),
            vmem_limit_bytes=_VMEM_LIMIT_BYTES,
        ),
        cost_estimate=pl.CostEstimate(
            flops=0, transcendentals=0, bytes_accessed=2 * x2d.nbytes
        ),
        # NOTE: no input_output_aliases — when x is still live at the jit
        # boundary XLA inserts a defensive copy, adding an extra HBM pass.
    )(x2d)


def _small_full_block_copy(x2d):
    """Single full-extent block copy for tiny arrays / sub-128-element tails."""
    return pl.pallas_call(
        _identity_kernel,
        out_shape=jax.ShapeDtypeStruct(x2d.shape, x2d.dtype),
    )(x2d)


def neural_network_forward(x, force_device_copy=False):
    """NeuralNetwork.forward placeholder.

    The PyTorch base class raises NotImplementedError, so the only defined
    semantics is identity.  Default path returns x with zero HBM traffic and
    no kernel launch.  `force_device_copy=True` exercises the tiled lane-dense
    Pallas copy a concrete subclass (e.g. SegmentationNetwork) would replace
    with real compute.
    """
    if not force_device_copy:
        # Optimal identity: no kernel, no HBM traffic.
        return x

    shape = x.shape
    total = int(x.size)
    if total == 0:
        return x
    itemsize = jnp.dtype(x.dtype).itemsize

    lane = _choose_lane_width(total)
    if lane is not None:
        rows = total // lane
        x2d = x.reshape(rows, lane)
        tile_rows = _choose_tile_rows(rows, lane, itemsize)
        return _lane_dense_copy(x2d, tile_rows).reshape(shape)

    # total not a multiple of 128: keep the bulk lane-dense (full-width,
    # unmasked stores) and handle only the small tail with a tiny
    # full-extent block — never degrade the whole copy to a narrow lane axis.
    lane = 512 if total >= 512 else 128
    flat = x.reshape(1, total)
    bulk_elems = (total // lane) * lane
    if bulk_elems == 0:
        return _small_full_block_copy(flat).reshape(shape)
    rows = bulk_elems // lane
    bulk = jax.lax.slice(flat, (0, 0), (1, bulk_elems)).reshape(rows, lane)
    tail = jax.lax.slice(flat, (0, bulk_elems), (1, total))
    tile_rows = _choose_tile_rows(rows, lane, itemsize)
    bulk_out = _lane_dense_copy(bulk, tile_rows).reshape(1, bulk_elems)
    tail_out = _small_full_block_copy(tail)
    return jnp.concatenate([bulk_out, tail_out], axis=1).reshape(shape)


if __name__ == "__main__":
    key = jax.random.PRNGKey(0)
    # Small NCHW input consistent with a 2D segmentation network input.
    x = jax.random.normal(key, (2, 4, 16, 16), dtype=jnp.float32)

    # Default path: identity with no kernel launch.
    y0 = neural_network_forward(x)
    jax.block_until_ready(y0)
    assert y0.shape == x.shape and y0.dtype == x.dtype
    assert bool(jnp.all(y0 == x))

    # Kernel path: tiled lane-dense Pallas copy.
    y1 = neural_network_forward(x, force_device_copy=True)
    jax.block_until_ready(y1)
    assert y1.shape == x.shape and y1.dtype == x.dtype
    assert bool(jnp.all(y1 == x))

    # Odd-size input (total % 128 != 0) exercises the bulk + tail path.
    x_odd = jax.random.normal(jax.random.PRNGKey(1), (2, 3, 7, 13),
                              dtype=jnp.float32)
    y2 = neural_network_forward(x_odd, force_device_copy=True)
    jax.block_until_ready(y2)
    assert y2.shape == x_odd.shape and y2.dtype == x_odd.dtype
    assert bool(jnp.all(y2 == x_odd))

    print("KERNEL_OK")
</pallas_src>

<mosaic_0001>
module attributes {stable_mosaic.version = 11 : i64} {
  func.func @_identity_kernel(%arg0: i32, %arg1: memref<8x256xf32, #tpu.memory_space<vmem>>, %arg2: memref<8x256xf32, #tpu.memory_space<vmem>>) attributes {dimension_semantics = [#tpu.dimension_semantics<parallel>], iteration_bounds = array<i64: 1>, scalar_prefetch = 0 : i64, scratch_operands = 0 : i64, tpu.core_type = #tpu.core_type<tc>, window_params = [{transform_indices = @transform_0, window_bounds = array<i64: 8, 256>}, {transform_indices = @transform_1, window_bounds = array<i64: 8, 256>}]} {
    %c0 = arith.constant 0 : index
    %c0_0 = arith.constant 0 : index
    %0 = vector.load %arg1[%c0, %c0_0] : memref<8x256xf32, #tpu.memory_space<vmem>>, vector<8x256xf32>
    %c0_1 = arith.constant 0 : index
    %c0_2 = arith.constant 0 : index
    %1 = vector.load %arg2[%c0_1, %c0_2] : memref<8x256xf32, #tpu.memory_space<vmem>>, vector<8x256xf32>
    tpu.vector_store %arg2[%c0_1, %c0_2], %0 {strides = array<i32>} : memref<8x256xf32, #tpu.memory_space<vmem>>, vector<8x256xf32>,
    return
  }
  func.func @transform_0(%arg0: i32) -> (i32, i32) {
    %c0_i32 = arith.constant 0 : i32
    %c0_i32_0 = arith.constant 0 : i32
    return %arg0, %c0_i32 : i32, i32
  }
  func.func @transform_1(%arg0: i32) -> (i32, i32) {
    %c0_i32 = arith.constant 0 : i32
    %c0_i32_0 = arith.constant 0 : i32
    return %arg0, %c0_i32 : i32, i32
  }
}

</mosaic_0001>

<bundles_post_ra>
// kernel: tpu_custom_call.1
= control target key start
LH: loop header
LB: loop body
LE: loop exit
PB: predicated region body
PF: predicated region fallthrough
CT: control target
= control target key end

     0   :  { %6 = vsyncpa [#allocation3], 0  ;;  %s104_s0 = inlined_call_operand.hbm [shape: f32[8,256], index: 0, kind: input, shape index: {}]   ;;  %s105_s1 = inlined_call_operand.hbm [shape: f32[8,256], index: 1, kind: output, shape index: {}]  }
   0x1   :  { %7 = vsyncpa [#allocation4], 0  ;;  %s86_s6 = smov [#allocation2]  }
   0x2   :  { %s14_s7 = sshll.u32 %s86_s6, 4  ;;  %s15_s7 = int_to_ptr.vmem [resolvable:$true] %s14_s7 }
   0x3   :  { %s50_s8 = scalar_lea.vmem %s15_s7, 256  ;;  %p55_p1 = scmp.lt.s32.totalorder %s15_s7, %s15_s7 }
   0x4   :  { %p51_p0 = scmp.ne.s32.totalorder %s15_s7, %s50_s8  ;;  %p56_p2 = scmp.lt.s32.totalorder %s50_s8, %s50_s8 }
   0x6   :  { %p57_p3 = por %p56_p2, %p55_p1 }
   0x8   :  { %p58_p4 = pnand %p57_p3, %p51_p0 }
   0xa   :  { %61 = shalt.err (!%p58_p4)
}
   0xb   :  { %17 = dma.hbm_to_vmem [thread:$0]  %s104_s0, 256, %s15_s7, [#allocation3]  }
   0xc   :  { %82 = dma.done.wait [#allocation3], 256  }
   0xd   :  { %83 = vsyncadd [#allocation3], 4294967040  ;;  %s87_s11 = smov [#allocation5]   ;;  %v21_v0 = vld [vmem:[#allocation2] sm:$0xff]  ;;  %v22_v1 = vld [vmem:[#allocation2 + $0x8] sm:$0xff] }
   0xe   :  { %s31_s12 = sshll.u32 %s87_s11, 4  ;;  %23 = vst [vmem:[#allocation5] sm:$0xff] %v21_v0  ;;  %24 = vst [vmem:[#allocation5 + $0x8] sm:$0xff] %v22_v1  ;;  %s32_s12 = int_to_ptr.vmem [resolvable:$true] %s31_s12 }
   0xf   :  { %s62_s13 = scalar_lea.vmem %s32_s12, 256  ;;  %p67_p6 = scmp.lt.s32.totalorder %s32_s12, %s32_s12 }
  0x10   :  { %p63_p5 = scmp.ne.s32.totalorder %s32_s12, %s62_s13  ;;  %p68_p7 = scmp.lt.s32.totalorder %s62_s13, %s62_s13 }
  0x12   :  { %p69_p8 = por %p68_p7, %p67_p6 }
  0x14   :  { %p70_p9 = pnand %p69_p8, %p63_p5 }
  0x16   :  { %73 = shalt.err (!%p70_p9)
}
  0x17   :  { %34 = dma.vmem_to_hbm [thread:$0]  %s32_s12, 256, %s105_s1, [#allocation4]  }
  0x18   :  { %84 = dma.done.wait [#allocation4], 256  }
  0x19   :  { %85 = vsyncadd [#allocation4], 4294967040 }
  0x1a   :  { %38 = vsyncpa [#allocation3], 1 }
  0x1b   :  { %39 = vsyncpa [#allocation4], 1 }

</bundles_post_ra>
